<compile_context>
chip_gen: v7x
topology: tpu7x:2x2x1
jax: 0.10.0
libtpu: 0.0.40
codegen_flags: <defaults>
</compile_context>

<pallas_src>
import functools

import jax
import jax.numpy as jnp
import numpy as np
from jax.experimental import pallas as pl
from jax.experimental.pallas import tpu as pltpu

LANES = 128
MAX_TILE_M = 8192          # (8192, 128) f32 block = 4 MiB; 8 MiB double-buffered


def _round_up(a, b):
    return -(-a // b) * b


def _cdiv(a, b):
    return -(-a // b)


def _num_tensorcores():
    """Best-effort TensorCore count (2 on v7x, 1 on v5e/v6e)."""
    try:
        info = pltpu.get_tpu_info()
        for name in ("num_cores", "core_count", "num_tensorcores",
                     "tensorcore_count", "cores_per_chip"):
            n = getattr(info, name, None)
            if isinstance(n, int) and n >= 1:
                return int(n)
    except Exception:
        pass
    return 1


def _entropy_kernel(x_ref, out_ref, acc_ref, *, eps, tiles_per_slice, tile_m,
                    acc_rows, valid_rows, needs_mask):
    """Accumulate sum(x * log(x + eps)) into interleaved VMEM accumulators."""
    j = pl.program_id(1)

    @pl.when(j == 0)
    def _():
        acc_ref[...] = jnp.zeros_like(acc_ref)

    x = x_ref[...].astype(jnp.float32)
    groups = tile_m // acc_rows

    def accumulate(xv):
        v = xv * jnp.log(xv + eps)
        # (tile_m, 128) -> (acc_rows, 128): pure elementwise VPU adds over
        # `groups` slabs, feeding acc_rows//8 independent accumulator chains.
        acc_ref[...] += v.reshape(groups, acc_rows, LANES).sum(axis=0)

    if needs_mask:
        # Logical row-tile index (the index_map clamps the DMA to a valid
        # block; rows past the real array are zeroed, exact since
        # 0 * log(0 + eps) == 0).  Only partial/overhang tiles pay the mask.
        t = pl.program_id(0) * tiles_per_slice + j
        row0 = t * tile_m
        is_partial = row0 + tile_m > valid_rows

        @pl.when(jnp.logical_not(is_partial))
        def _():
            accumulate(x)

        @pl.when(is_partial)
        def _():
            rows = jax.lax.broadcasted_iota(jnp.int32, x.shape, 0) + row0
            accumulate(jnp.where(rows < valid_rows, x, 0.0))
    else:
        accumulate(x)

    @pl.when(j == pl.num_programs(1) - 1)
    def _():
        out_ref[0, 0] = jnp.sum(acc_ref[...])


def entropy_loss_encap(x, eps=1e-12):
    """JAX/Pallas equivalent of EntropyLossEncap.forward (input (B, C, ...))."""
    total = int(np.prod(x.shape))
    denom = total // int(x.shape[1])        # mean over all dims except dim=1

    # Keep the original dtype on the wire (bf16 stays bf16 -> half the HBM
    # traffic); the f32 upcast happens in-register inside the kernel.
    flat = x.reshape(-1)                    # free for a contiguous array
    if total % LANES != 0:
        # Rare fallback: pad the tail lane (one copy); zero padding is exact.
        flat = jnp.pad(flat, (0, (-total) % LANES))
    m = flat.shape[0] // LANES
    x2 = flat.reshape(m, LANES)             # lane-dense slab, no data movement

    # Multiple of 16 keeps bf16 sublane packing happy; 8192 rows = 4 MiB f32.
    tile_m = min(MAX_TILE_M, _round_up(m, 16))
    total_tiles = _cdiv(m, tile_m)

    p_slices = max(1, min(_num_tensorcores(), total_tiles))
    tiles_per_slice = _cdiv(total_tiles, p_slices)
    # Masking only needed when the (p, j) grid over-covers the real rows.
    needs_mask = (p_slices * tiles_per_slice * tile_m != m)

    # Interleave accumulators (breaks the serial add chain) when tile allows.
    acc_rows = 32 if tile_m % 32 == 0 else 8

    kernel = functools.partial(
        _entropy_kernel,
        eps=float(eps),
        tiles_per_slice=tiles_per_slice,
        tile_m=tile_m,
        acc_rows=acc_rows,
        valid_rows=m,
        needs_mask=needs_mask,
    )

    last_tile = total_tiles - 1

    def in_map(p, j):
        # Clamp so overhanging grid steps DMA a valid block; the kernel masks
        # their rows to zero, so they contribute nothing.
        return (jnp.minimum(p * tiles_per_slice + j, last_tile), 0)

    partials = pl.pallas_call(
        kernel,
        out_shape=jax.ShapeDtypeStruct((p_slices, 1), jnp.float32),
        grid_spec=pltpu.PrefetchScalarGridSpec(
            num_scalar_prefetch=0,
            grid=(p_slices, tiles_per_slice),
            in_specs=[pl.BlockSpec((tile_m, LANES), in_map)],
            out_specs=pl.BlockSpec(
                (1, 1), lambda p, j: (p, 0), memory_space=pltpu.SMEM
            ),
            scratch_shapes=[pltpu.VMEM((acc_rows, LANES), jnp.float32)],
        ),
        compiler_params=pltpu.CompilerParams(
            dimension_semantics=("parallel", "arbitrary"),
        ),
        cost_estimate=pl.CostEstimate(
            flops=3 * total,
            transcendentals=total,
            bytes_accessed=total * x.dtype.itemsize + 4 * p_slices,
        ),
    )(x2)

    # Combine per-slice partials; negate and normalize (tiny scalar epilogue).
    return -jnp.sum(partials) / jnp.float32(denom)


def _reference(x, eps=1e-12):
    xf = x.astype(jnp.float32)
    b = xf * jnp.log(xf + eps)
    b = -1.0 * b.sum(axis=1)
    return b.mean()


if __name__ == "__main__":
    key = jax.random.PRNGKey(0)
    B, C, H, W = 2, 4, 16, 16
    logits = jax.random.normal(key, (B, C, H, W), dtype=jnp.float32)
    # entropy loss is typically applied to a probability map over channels
    x = jax.nn.softmax(logits, axis=1)

    out = jax.block_until_ready(entropy_loss_encap(x))
    ref = jax.block_until_ready(_reference(x))
    assert np.allclose(np.asarray(out), np.asarray(ref), rtol=1e-5, atol=1e-6), (
        f"mismatch: kernel={out} ref={ref}"
    )

    # Extra edge case: shape whose flattened row count is not a multiple of
    # the tile (exercises the partial-tile masking path).
    x3 = jax.nn.softmax(
        jax.random.normal(jax.random.PRNGKey(1), (3, 5, 7, 11), jnp.float32), axis=1
    )
    out3 = jax.block_until_ready(entropy_loss_encap(x3))
    ref3 = jax.block_until_ready(_reference(x3))
    assert np.allclose(np.asarray(out3), np.asarray(ref3), rtol=1e-5, atol=1e-6), (
        f"mismatch (ragged): kernel={out3} ref={ref3}"
    )

    print("KERNEL_OK")
</pallas_src>

<mosaic_0001>
module attributes {stable_mosaic.version = 11 : i64} {
  func.func @_entropy_kernel(%arg0: i32, %arg1: i32, %arg2: memref<16x128xf32, #tpu.memory_space<vmem>>, %arg3: memref<1x1xf32, #tpu.memory_space<smem>>, %arg4: memref<8x128xf32, #tpu.memory_space<vmem>>) attributes {dimension_semantics = [#tpu.dimension_semantics<parallel>, #tpu.dimension_semantics<arbitrary>], iteration_bounds = array<i64: 1, 1>, scalar_prefetch = 0 : i64, scratch_operands = 1 : i64, tpu.core_type = #tpu.core_type<tc>, window_params = [{transform_indices = @transform_0, window_bounds = array<i64: 16, 128>}, {transform_indices = @transform_1, window_bounds = array<i64: 1, 1>}]} {
    %c0_i32 = arith.constant 0 : i32
    %0 = arith.cmpi eq, %arg1, %c0_i32 : i32
    %1 = arith.extui %0 : i1 to i32
    %c0_i32_0 = arith.constant 0 : i32
    %2 = arith.cmpi ne, %1, %c0_i32_0 : i32
    scf.if %2 {
      %cst_9 = arith.constant 0.000000e+00 : f32
      %16 = vector.broadcast %cst_9 : f32 to vector<8x128xf32>
      %c0_10 = arith.constant 0 : index
      %c0_11 = arith.constant 0 : index
      %17 = vector.load %arg4[%c0_10, %c0_11] : memref<8x128xf32, #tpu.memory_space<vmem>>, vector<8x128xf32>
      tpu.vector_store %arg4[%c0_10, %c0_11], %16 {strides = array<i32>} : memref<8x128xf32, #tpu.memory_space<vmem>>, vector<8x128xf32>,
    } else {
    }
    %c0 = arith.constant 0 : index
    %c0_1 = arith.constant 0 : index
    %3 = vector.load %arg2[%c0, %c0_1] : memref<16x128xf32, #tpu.memory_space<vmem>>, vector<16x128xf32>
    %cst = arith.constant 9.99999996E-13 : f32
    %4 = vector.broadcast %cst : f32 to vector<16x128xf32>
    %5 = arith.addf %3, %4 : vector<16x128xf32>
    %6 = math.log %5 : vector<16x128xf32>
    %7 = arith.mulf %3, %6 : vector<16x128xf32>
    %c0_2 = arith.constant 0 : index
    %c0_3 = arith.constant 0 : index
    %8 = vector.load %arg4[%c0_2, %c0_3] : memref<8x128xf32, #tpu.memory_space<vmem>>, vector<8x128xf32>
    %9 = vector.shape_cast %7 : vector<16x128xf32> to vector<2x8x128xf32>
    %cst_4 = arith.constant dense<0.000000e+00> : vector<8x128xf32>
    %10 = vector.multi_reduction <add>, %9, %cst_4 [0] : vector<2x8x128xf32> to vector<8x128xf32>
    %11 = arith.addf %8, %10 : vector<8x128xf32>
    %c0_5 = arith.constant 0 : index
    %c0_6 = arith.constant 0 : index
    %12 = vector.load %arg4[%c0_5, %c0_6] : memref<8x128xf32, #tpu.memory_space<vmem>>, vector<8x128xf32>
    tpu.vector_store %arg4[%c0_5, %c0_6], %11 {strides = array<i32>} : memref<8x128xf32, #tpu.memory_space<vmem>>, vector<8x128xf32>,
    %c0_i32_7 = arith.constant 0 : i32
    %13 = arith.cmpi eq, %arg1, %c0_i32_7 : i32
    %14 = arith.extui %13 : i1 to i32
    %c0_i32_8 = arith.constant 0 : i32
    %15 = arith.cmpi ne, %14, %c0_i32_8 : i32
    scf.if %15 {
      %c0_9 = arith.constant 0 : index
      %c0_10 = arith.constant 0 : index
      %16 = vector.load %arg4[%c0_9, %c0_10] : memref<8x128xf32, #tpu.memory_space<vmem>>, vector<8x128xf32>
      %17 = vector.shape_cast %16 : vector<8x128xf32> to vector<1x8x128xf32>
      %cst_11 = arith.constant dense<0.000000e+00> : vector<1xf32>
      %18 = vector.multi_reduction <add>, %17, %cst_11 [1, 2] : vector<1x8x128xf32> to vector<1xf32>
      %19 = vector.shape_cast %18 : vector<1xf32> to vector<1x1x1xf32>
      %20 = vector.extract %19[0, 0, 0] : f32 from vector<1x1x1xf32>
      %c0_12 = arith.constant 0 : index
      %c0_13 = arith.constant 0 : index
      %21 = memref.load %arg3[%c0_12, %c0_13] : memref<1x1xf32, #tpu.memory_space<smem>>
      memref.store %20, %arg3[%c0_12, %c0_13] : memref<1x1xf32, #tpu.memory_space<smem>>
    } else {
    }
    return
  }
  func.func @transform_0(%arg0: i32, %arg1: i32) -> (i32, i32) {
    %c1_i32 = arith.constant 1 : i32
    %0 = arith.muli %arg0, %c1_i32 : i32
    %1 = arith.addi %0, %arg1 : i32
    %c0_i32 = arith.constant 0 : i32
    %2 = arith.minsi %1, %c0_i32 : i32
    %c0_i32_0 = arith.constant 0 : i32
    %c0_i32_1 = arith.constant 0 : i32
    return %2, %c0_i32_0 : i32, i32
  }
  func.func @transform_1(%arg0: i32, %arg1: i32) -> (i32, i32) {
    %c0_i32 = arith.constant 0 : i32
    %c0_i32_0 = arith.constant 0 : i32
    return %arg0, %c0_i32 : i32, i32
  }
}

</mosaic_0001>

<bundles_post_ra>
// kernel: tpu_custom_call.1
= control target key start
LH: loop header
LB: loop body
LE: loop exit
PB: predicated region body
PF: predicated region fallthrough
CT: control target
= control target key end

     0   :  { %6 = vsyncpa [#allocation4], 0  ;;  %s167_s0 = inlined_call_operand.hbm [shape: f32[16,128], index: 0, kind: input, shape index: {}]   ;;  %s168_s1 = inlined_call_operand.hbm [shape: f32[1,1], index: 1, kind: output, shape index: {}]  }
   0x1   :  { %7 = vsyncpa [#allocation5], 0  ;;  %s129_s6 = smov [#allocation3]   ;;  %s93_s10 = scalar_lea.hbm %s167_s0, 256 }
   0x2   :  { %s19_s7 = sshll.u32 %s129_s6, 4  ;;  %p94_p0 = scmp.ne.s32.totalorder %s167_s0, %s93_s10  ;;  %s20_s7 = int_to_ptr.vmem [resolvable:$true] %s19_s7 }
   0x3   :  { %p97_p1 = scmp.lt.u32.totalorder %s93_s10, %s167_s0 }
   0x5   :  { %p99_p2 = pnand %p97_p1, %p94_p0 }
   0x7   :  { %102 = shalt.err (!%p99_p2)
}
   0x8   :  { %s103_s15 = scalar_lea.vmem %s20_s7, 256  ;;  %p108_p4 = scmp.lt.s32.totalorder %s20_s7, %s20_s7 }
   0x9   :  { %p104_p3 = scmp.ne.s32.totalorder %s20_s7, %s103_s15  ;;  %p109_p5 = scmp.lt.s32.totalorder %s103_s15, %s103_s15 }
   0xb   :  { %p110_p6 = por %p109_p5, %p108_p4 }
   0xd   :  { %p111_p7 = pnand %p110_p6, %p104_p3 }
   0xf   :  { %114 = shalt.err (!%p111_p7)
}
  0x10   :  { %s130_s16 = smov 128   ;;  %s131_s17 = smov 8  }
  0x11   :  { %25 = dma.hbm_to_vmem [thread:$0]  %s167_s0, 256, %s20_s7, [#allocation4], %s130_s16, %s130_s16, %s131_s17  }
  0x12   :  { %125 = dma.done.wait [#allocation4], 256  }
  0x13   :  { %126 = vsyncadd [#allocation4], 4294967040  ;;  %v38_v0 = vld [vmem:[#allocation3] sm:$0xff]  ;;  %v39_v1 = vld [vmem:[#allocation3 + $0x8] sm:$0xff]  ;;  %s115_s22 = scalar_lea.hbm %s168_s1, 16 }
  0x14   :  { %v40_v2 = vadd.f32 1e-12, %v38_v0  ;;  %v41_v3 = vadd.f32 1e-12, %v39_v1  ;;  %p116_p8 = scmp.ne.s32.totalorder %s168_s1, %s115_s22  ;;  %p119_p9 = scmp.lt.u32.totalorder %s115_s22, %s168_s1 }
  0x16   :  { %89 = vlog2.f32 %v40_v2  ;;  %p121_p10 = pnand %p119_p9, %p116_p8 }
  0x17   :  { %91 = vlog2.f32 %v41_v3 }
  0x20   :  { %v90_v4 = vpop.eup %89 }
  0x21   :  { %v92_v5 = vpop.eup %91  ;;  %v43_v6 = vmul.f32 0.6931472, %v90_v4 }
  0x22   :  { %v45_v7 = vmul.f32 0.6931472, %v92_v5 }
  0x23   :  { %v46_v8 = vmul.f32 %v43_v6, %v38_v0 }
  0x24   :  { %v47_v9 = vmul.f32 %v45_v7, %v39_v1 }
  0x26   :  { %v49_v10 = vadd.f32 %v47_v9, %v46_v8 }
  0x28   :  { %56 = vadd.xlane.f32.xlu0 %v49_v10 }
  0xb5   :  { %v57_v11 = vpop.xlane.xlu0 %56 }
  0xb6   :  { %v58_v12 = vrot.slane %v57_v11, 4 }
  0xb8   :  { %v59_v13 = vadd.f32 %v58_v12, %v57_v11 }
  0xba   :  { %v60_v14 = vrot.slane %v59_v13, 2 }
  0xbc   :  { %v61_v15 = vadd.f32 %v60_v14, %v59_v13 }
  0xbe   :  { %v62_v16 = vrot.slane %v61_v15, 1 }
  0xc0   :  { %v63_v17 = vadd.f32 %v62_v16, %v61_v15 }
  0xc2   :  { %83 = vpush %v63_v17 }
  0xf3   :  { %s84_s0 = spop %83 }
  0xf4   :  { %66 = sst [smem:[#allocation6]] %s84_s0 }
  0xf5   :  { %124 = shalt.err (!%p121_p10)
}
  0xf6   :  { %s132_s27 = smov [#allocation6]  }
  0xf7   :  { %74 = dma.smem_to_hbm %s132_s27, 16, %s168_s1, [#allocation5]  }
  0xf8   :  { %127 = dma.done.wait [#allocation5], 16  }
  0xf9   :  { %128 = vsyncadd [#allocation5], 4294967280 }
  0xfa   :  { %78 = sfence }
  0xfb   :  { %79 = vsyncpa [#allocation4], 1 }
  0xfc   :  { %80 = vsyncpa [#allocation5], 1 }

</bundles_post_ra>
